<compile_context>
chip_gen: v5e
topology: v5e:2x2
jax: 0.10.0
libtpu: 0.0.40
codegen_flags: <defaults>
</compile_context>

<pallas_src>
import jax
import jax.numpy as jnp
import numpy as np
from jax.experimental import pallas as pl
from jax.experimental.pallas import tpu as pltpu

EPS = 1e-5
K = 4  # all (transposed) convolutions in this decoder use a 4x4 kernel


def _round_up(x, m):
    return -(-x // m) * m


def _choose_tiles(m, align):
    """Pick (padded M, TILE_M).  TILE_M <= 512, aligned to `align`."""
    if m >= 512:
        tile = 512
    else:
        tile = _round_up(m, align)
    return _round_up(m, tile), tile


# ----------------------------------------------------------------------------
# Pallas kernels
# ----------------------------------------------------------------------------
def _matmul_stats_kernel(x_ref, w_ref, y_ref, s_ref, ss_ref):
    """One MXU matmul per grid cell + per-tile BN partial statistics.

    x_ref : (1, TILE_M, Kc)  bf16   im2col rows of one parity slab
    w_ref : (1, Kc, Co)      bf16   sub-pixel weight of that parity
    y_ref : (1, TILE_M, Co)  f32    conv output tile (pre-BN)
    s_ref : (1, 8, Co)       f32    per-tile column sums (broadcast on rows)
    ss_ref: (1, 8, Co)       f32    per-tile column sums of squares
    """
    y = jnp.dot(x_ref[0], w_ref[0], preferred_element_type=jnp.float32)
    y_ref[0] = y
    s = jnp.sum(y, axis=0, keepdims=True)
    ss = jnp.sum(y * y, axis=0, keepdims=True)
    s_ref[0] = jnp.broadcast_to(s, s_ref.shape[1:])
    ss_ref[0] = jnp.broadcast_to(ss, ss_ref.shape[1:])


def _scale_shift_relu_kernel(y_ref, a_ref, b_ref, o_ref):
    """o = relu(y * a + b)   (BN normalize pass, per-channel affine in f32)."""
    o = jnp.maximum(y_ref[0] * a_ref[...] + b_ref[...], 0.0)
    o_ref[0] = o.astype(o_ref.dtype)


def _matmul_tanh_kernel(w_ref, x_ref, o_ref):
    """Final layer (transposed form): o = tanh(W @ X), lane axis = M."""
    o_ref[0] = jnp.tanh(
        jnp.dot(w_ref[0], x_ref[0], preferred_element_type=jnp.float32))


# ----------------------------------------------------------------------------
# pallas_call wrappers
# ----------------------------------------------------------------------------
def _matmul_stats(a, w, tile_m):
    """a: (P, Mpad, Kc) bf16, w: (P, Kc, Co) bf16 -> conv output + partial stats."""
    P, Mpad, Kc = a.shape
    Co = w.shape[-1]
    mt = Mpad // tile_m
    flops = 2 * P * Mpad * Kc * Co
    bytes_accessed = (a.size * a.dtype.itemsize + w.size * w.dtype.itemsize
                      + P * Mpad * Co * 4)
    y, s, ss = pl.pallas_call(
        _matmul_stats_kernel,
        grid=(P, mt),
        in_specs=[
            pl.BlockSpec((1, tile_m, Kc), lambda p, m: (p, m, 0)),
            pl.BlockSpec((1, Kc, Co), lambda p, m: (p, 0, 0)),
        ],
        out_specs=[
            pl.BlockSpec((1, tile_m, Co), lambda p, m: (p, m, 0)),
            pl.BlockSpec((1, 8, Co), lambda p, m: (p, m, 0)),
            pl.BlockSpec((1, 8, Co), lambda p, m: (p, m, 0)),
        ],
        out_shape=[
            jax.ShapeDtypeStruct((P, Mpad, Co), jnp.float32),
            jax.ShapeDtypeStruct((P, mt * 8, Co), jnp.float32),
            jax.ShapeDtypeStruct((P, mt * 8, Co), jnp.float32),
        ],
        compiler_params=pltpu.CompilerParams(
            dimension_semantics=("parallel", "parallel")),
        cost_estimate=pl.CostEstimate(
            flops=flops, transcendentals=0, bytes_accessed=bytes_accessed),
    )(a, w)
    return y, s, ss


def _scale_shift_relu(y, scale, shift, tile_m, out_dtype=jnp.bfloat16):
    """y: (P, Mpad, Co) f32; scale/shift: (1, Co) f32 -> relu(y*scale+shift)."""
    P, Mpad, Co = y.shape
    mt = Mpad // tile_m
    return pl.pallas_call(
        _scale_shift_relu_kernel,
        grid=(P, mt),
        in_specs=[
            pl.BlockSpec((1, tile_m, Co), lambda p, m: (p, m, 0)),
            pl.BlockSpec((1, Co), lambda p, m: (0, 0)),
            pl.BlockSpec((1, Co), lambda p, m: (0, 0)),
        ],
        out_specs=pl.BlockSpec((1, tile_m, Co), lambda p, m: (p, m, 0)),
        out_shape=jax.ShapeDtypeStruct((P, Mpad, Co), out_dtype),
        compiler_params=pltpu.CompilerParams(
            dimension_semantics=("parallel", "parallel")),
    )(y, scale, shift)


def _matmul_tanh_t(w, a, tile_m):
    """w: (P, CoPad, Kc) bf16, a: (P, Kc, Mpad) bf16 -> tanh(w @ a) in f32."""
    P, CoPad, Kc = w.shape
    Mpad = a.shape[-1]
    mt = Mpad // tile_m
    flops = 2 * P * CoPad * Kc * Mpad
    bytes_accessed = (w.size * w.dtype.itemsize + a.size * a.dtype.itemsize
                      + P * CoPad * Mpad * 4)
    return pl.pallas_call(
        _matmul_tanh_kernel,
        grid=(P, mt),
        in_specs=[
            pl.BlockSpec((1, CoPad, Kc), lambda p, m: (p, 0, 0)),
            pl.BlockSpec((1, Kc, tile_m), lambda p, m: (p, 0, m)),
        ],
        out_specs=pl.BlockSpec((1, CoPad, tile_m), lambda p, m: (p, 0, m)),
        out_shape=jax.ShapeDtypeStruct((P, CoPad, Mpad), jnp.float32),
        compiler_params=pltpu.CompilerParams(
            dimension_semantics=("parallel", "parallel")),
        cost_estimate=pl.CostEstimate(
            flops=flops, transcendentals=P * CoPad * Mpad,
            bytes_accessed=bytes_accessed),
    )(w, a)


# ----------------------------------------------------------------------------
# Weight re-arrangement (sub-pixel decomposition), precomputed in __init__
# ----------------------------------------------------------------------------
def _subpixel_weight(w_pt):
    """(Ci, Co, 4, 4) ConvTranspose weight -> (4 parities, 4*Ci, Co) bf16."""
    ws = []
    for py in (0, 1):
        for px in (0, 1):
            taps = [w_pt[:, :, 3 - py - 2 * dy, 3 - px - 2 * dx]
                    for dy in (0, 1) for dx in (0, 1)]        # each (Ci, Co)
            ws.append(jnp.concatenate(taps, axis=0))          # (4*Ci, Co)
    return jnp.stack(ws, 0).astype(jnp.bfloat16)


def _subpixel_weight_t(w_pt, co_pad):
    """Same as above but transposed + channel-padded: (4, CoPad, 4*Ci) bf16."""
    co = w_pt.shape[1]
    ws = []
    for py in (0, 1):
        for px in (0, 1):
            taps = [w_pt[:, :, 3 - py - 2 * dy, 3 - px - 2 * dx]
                    for dy in (0, 1) for dx in (0, 1)]
            wl = jnp.concatenate(taps, axis=0).T              # (Co, 4*Ci)
            ws.append(jnp.pad(wl, ((0, co_pad - co), (0, 0))))
    return jnp.stack(ws, 0).astype(jnp.bfloat16)


# ----------------------------------------------------------------------------
# Decoder
# ----------------------------------------------------------------------------
class DecoderPallas:
    """JAX/Pallas port of the PyTorch DCGAN Decoder (n_extra_layers=0, ngpu=1)."""

    def __init__(self, isize, nz, nc, ngf, key):
        assert isize % 16 == 0, "isize has to be a multiple of 16"
        cngf, tisize = ngf // 2, 4
        while tisize != isize:
            cngf *= 2
            tisize *= 2
        self.isize, self.nz, self.nc, self.cngf = isize, nz, nc, cngf

        keys = iter(jax.random.split(key, 64))

        def nrm(shape, scale=0.05):
            return scale * jax.random.normal(next(keys), shape, jnp.float32)

        # raw PyTorch-layout parameters (also used by the pure-JAX reference)
        self.initial = (nrm((nz, cngf, K, K)),
                        1.0 + nrm((cngf,), 0.1),
                        nrm((cngf,), 0.1))
        self.pyramid = []
        csize, c = 4, cngf
        while csize < isize // 2:
            self.pyramid.append((nrm((c, c // 2, K, K)),
                                 1.0 + nrm((c // 2,), 0.1),
                                 nrm((c // 2,), 0.1)))
            c //= 2
            csize *= 2
        self.final_w = nrm((c, nc, K, K))

        # ---- precomputed kernel-layout weights (hoisted out of forward) ----
        # initial ConvT(nz, cngf, 4, 1, 0) on a 1x1 input == one matmul:
        #   out[n, ky, kx, c] = sum_z x[n, z] * W[z, c, ky, kx]
        w0 = self.initial[0]
        self.w0_mat = (jnp.transpose(w0, (0, 2, 3, 1))
                       .reshape(1, nz, 16 * cngf).astype(jnp.bfloat16))
        self.pyramid_mats = [_subpixel_weight(w) for (w, _, _) in self.pyramid]
        self.nc_pad = _round_up(nc, 8)
        self.final_mat = _subpixel_weight_t(self.final_w, self.nc_pad)

    # -- helpers ------------------------------------------------------------
    @staticmethod
    def _bn_scale_shift(ssum, sssum, count, gamma, beta):
        mean = ssum / count
        var = jnp.maximum(sssum / count - mean * mean, 0.0)   # biased variance
        scale = gamma * jax.lax.rsqrt(var + EPS)
        shift = beta - mean * scale
        return scale, shift

    def _pyramid_layer(self, act, wp, gamma, beta):
        """ConvT(Ci, Co, 4, 2, 1) + BN(batch stats) + ReLU.  act: (N,H,W,Ci) NHWC."""
        N, H, W, Ci = act.shape
        Co = wp.shape[-1]
        M = N * H * W
        xp = jnp.pad(act, ((0, 0), (1, 1), (1, 1), (0, 0)))
        # per-parity im2col: (4, M, 4*Ci), taps folded into the contraction dim
        slabs = []
        for py in (0, 1):
            for px in (0, 1):
                taps = [xp[:, py + dy:py + dy + H, px + dx:px + dx + W, :]
                        for dy in (0, 1) for dx in (0, 1)]
                slabs.append(jnp.concatenate(taps, axis=-1).reshape(M, 4 * Ci))
        a = jnp.stack(slabs, 0).astype(jnp.bfloat16)
        Mpad, tm = _choose_tiles(M, 16)
        if Mpad != M:
            a = jnp.pad(a, ((0, 0), (0, Mpad - M), (0, 0)))

        y, s, ss = _matmul_stats(a, wp, tm)
        ssum = s[:, ::8, :].sum(axis=(0, 1))
        sssum = ss[:, ::8, :].sum(axis=(0, 1))
        scale, shift = self._bn_scale_shift(ssum, sssum, float(4 * M),
                                            gamma, beta)
        yn = _scale_shift_relu(y, scale[None], shift[None], tm)  # (4,Mpad,Co) bf16

        # interleave the 4 parities into (N, 2H, 2W, Co)
        yn = yn[:, :M].reshape(2, 2, N, H, W, Co)
        return jnp.transpose(yn, (2, 3, 0, 4, 1, 5)).reshape(N, 2 * H, 2 * W, Co)

    def _final_layer(self, act, wf):
        """ConvT(Ci, nc, 4, 2, 1) + tanh, transposed (lane-dense) form -> NCHW."""
        N, H, W, Ci = act.shape
        nc = self.nc
        M = N * H * W
        xp = jnp.pad(act, ((0, 0), (1, 1), (1, 1), (0, 0)))
        xpt = jnp.transpose(xp, (3, 0, 1, 2))                 # (Ci, N, H+2, W+2)
        slabs = []
        for py in (0, 1):
            for px in (0, 1):
                taps = [xpt[:, :, py + dy:py + dy + H, px + dx:px + dx + W]
                        for dy in (0, 1) for dx in (0, 1)]
                slabs.append(jnp.concatenate(taps, 0).reshape(4 * Ci, M))
        a = jnp.stack(slabs, 0).astype(jnp.bfloat16)          # (4, 4*Ci, M)
        Mpad, tm = _choose_tiles(M, 128)
        if Mpad != M:
            a = jnp.pad(a, ((0, 0), (0, 0), (0, Mpad - M)))

        y = _matmul_tanh_t(wf, a, tm)                         # (4, nc_pad, Mpad) f32
        y = y[:, :nc, :M].reshape(2, 2, nc, N, H, W)
        # (py, px, c, n, h, w) -> (n, c, h, py, w, px) -> NCHW
        return jnp.transpose(y, (3, 2, 4, 0, 5, 1)).reshape(N, nc, 2 * H, 2 * W)

    # -- forward ------------------------------------------------------------
    def __call__(self, x_nchw):
        N = x_nchw.shape[0]
        cngf = self.cngf

        # ---- initial ConvT(nz, cngf, 4, 1, 0) + BN + ReLU  (pure matmul) ----
        x2d = x_nchw.reshape(N, self.nz).astype(jnp.bfloat16)
        Mpad, tm = _choose_tiles(N, 16)
        a0 = jnp.pad(x2d, ((0, Mpad - N), (0, 0)))[None]       # (1, Mpad, nz)
        y, s, ss = _matmul_stats(a0, self.w0_mat, tm)          # (1, Mpad, 16*cngf)

        g0, b0 = self.initial[1], self.initial[2]
        # regroup the 16 (ky,kx) column groups into per-channel stats
        ssum = s[:, ::8, :].sum(axis=(0, 1)).reshape(16, cngf).sum(0)
        sssum = ss[:, ::8, :].sum(axis=(0, 1)).reshape(16, cngf).sum(0)
        scale, shift = self._bn_scale_shift(ssum, sssum, float(16 * N), g0, b0)
        scale16 = jnp.tile(scale, 16)[None]
        shift16 = jnp.tile(shift, 16)[None]
        act = _scale_shift_relu(y, scale16, shift16, tm)[0, :N]  # (N, 16*cngf) bf16
        act = act.reshape(N, K, K, cngf)                         # NHWC (N, 4, 4, cngf)

        # ---- pyramid ConvT(c, c//2, 4, 2, 1) + BN + ReLU ----
        for (_, g, b), wp in zip(self.pyramid, self.pyramid_mats):
            act = self._pyramid_layer(act, wp, g, b)

        # ---- final ConvT(c, nc, 4, 2, 1) + tanh -> NCHW ----
        return self._final_layer(act, self.final_mat)


# ----------------------------------------------------------------------------
# Pure-JAX reference (for correctness check only)
# ----------------------------------------------------------------------------
def _ref_convT(x_nchw, w_pt, stride, pad):
    rhs = jnp.transpose(w_pt[:, :, ::-1, ::-1], (1, 0, 2, 3))   # OIHW, flipped
    return jax.lax.conv_general_dilated(
        x_nchw, rhs, window_strides=(1, 1),
        padding=[(K - 1 - pad, K - 1 - pad)] * 2,
        lhs_dilation=(stride, stride),
        dimension_numbers=("NCHW", "OIHW", "NCHW"))


def _ref_bn_relu(y, g, b):
    mean = jnp.mean(y, axis=(0, 2, 3), keepdims=True)
    var = jnp.mean((y - mean) ** 2, axis=(0, 2, 3), keepdims=True)
    yn = (y - mean) / jnp.sqrt(var + EPS)
    yn = yn * g.reshape(1, -1, 1, 1) + b.reshape(1, -1, 1, 1)
    return jnp.maximum(yn, 0.0)


def decoder_ref(dec, x_nchw):
    w0, g0, b0 = dec.initial
    y = _ref_bn_relu(_ref_convT(x_nchw, w0, 1, 0), g0, b0)
    for (w, g, b) in dec.pyramid:
        y = _ref_bn_relu(_ref_convT(y, w, 2, 1), g, b)
    return jnp.tanh(_ref_convT(y, dec.final_w, 2, 1))


if __name__ == "__main__":
    key = jax.random.PRNGKey(0)
    kparams, kx = jax.random.split(key)

    isize, nz, nc, ngf = 16, 8, 3, 8        # small shapes; cngf = 2*ngf = 16
    dec = DecoderPallas(isize, nz, nc, ngf, kparams)

    x = jax.random.normal(kx, (2, nz, 1, 1), jnp.float32)   # latent input (NCHW)

    fwd = jax.jit(dec.__call__)
    out = jax.block_until_ready(fwd(x))
    assert out.shape == (2, nc, isize, isize)

    # bf16 MXU operands (f32 accumulation) vs the f32 reference -> loose-ish tol
    ref = decoder_ref(dec, x)
    np.testing.assert_allclose(np.asarray(out), np.asarray(ref),
                               atol=5e-2, rtol=5e-2)

    print("KERNEL_OK")
</pallas_src>

<mosaic_0001>
module attributes {stable_mosaic.version = 11 : i64} {
  func.func @_matmul_stats_kernel(%arg0: i32, %arg1: i32, %arg2: memref<1x16x8xbf16, #tpu.memory_space<vmem>>, %arg3: memref<1x8x256xbf16, #tpu.memory_space<vmem>>, %arg4: memref<1x16x256xf32, #tpu.memory_space<vmem>>, %arg5: memref<1x8x256xf32, #tpu.memory_space<vmem>>, %arg6: memref<1x8x256xf32, #tpu.memory_space<vmem>>) attributes {dimension_semantics = [#tpu.dimension_semantics<parallel>, #tpu.dimension_semantics<parallel>], iteration_bounds = array<i64: 1, 1>, scalar_prefetch = 0 : i64, scratch_operands = 0 : i64, tpu.core_type = #tpu.core_type<tc>, window_params = [{transform_indices = @transform_0, window_bounds = array<i64: 1, 16, 8>}, {transform_indices = @transform_1, window_bounds = array<i64: 1, 8, 256>}, {transform_indices = @transform_2, window_bounds = array<i64: 1, 16, 256>}, {transform_indices = @transform_3, window_bounds = array<i64: 1, 8, 256>}, {transform_indices = @transform_4, window_bounds = array<i64: 1, 8, 256>}]} {
    %c0 = arith.constant 0 : index
    %c0_0 = arith.constant 0 : index
    %c0_1 = arith.constant 0 : index
    %0 = vector.load %arg2[%c0, %c0_0, %c0_1] : memref<1x16x8xbf16, #tpu.memory_space<vmem>>, vector<1x16x8xbf16>
    %1 = vector.shape_cast %0 : vector<1x16x8xbf16> to vector<16x8xbf16>
    %c0_2 = arith.constant 0 : index
    %c0_3 = arith.constant 0 : index
    %c0_4 = arith.constant 0 : index
    %2 = vector.load %arg3[%c0_2, %c0_3, %c0_4] : memref<1x8x256xbf16, #tpu.memory_space<vmem>>, vector<1x8x256xbf16>
    %3 = vector.shape_cast %2 : vector<1x8x256xbf16> to vector<8x256xbf16>
    %cst = arith.constant dense<0.000000e+00> : vector<16x256xf32>
    %4 = tpu.matmul %1, %3, %cst {dimension_numbers = #tpu.dot_dimension_numbers<[1], [0], [0], [1], [0, 0, 1, 1], [], []>} : vector<16x8xbf16>, vector<8x256xbf16>, vector<16x256xf32> -> vector<16x256xf32>
    %c0_5 = arith.constant 0 : index
    %c0_6 = arith.constant 0 : index
    %c0_7 = arith.constant 0 : index
    %5 = vector.load %arg4[%c0_5, %c0_6, %c0_7] : memref<1x16x256xf32, #tpu.memory_space<vmem>>, vector<1x16x256xf32>
    %6 = vector.shape_cast %5 : vector<1x16x256xf32> to vector<16x256xf32>
    %7 = vector.shape_cast %4 : vector<16x256xf32> to vector<1x16x256xf32>
    tpu.vector_store %arg4[%c0_5, %c0_6, %c0_7], %7 {strides = array<i32>} : memref<1x16x256xf32, #tpu.memory_space<vmem>>, vector<1x16x256xf32>,
    %cst_8 = arith.constant dense<0.000000e+00> : vector<256xf32>
    %8 = vector.multi_reduction <add>, %4, %cst_8 [0] : vector<16x256xf32> to vector<256xf32>
    %9 = vector.shape_cast %8 : vector<256xf32> to vector<1x256xf32>
    %10 = arith.mulf %4, %4 : vector<16x256xf32>
    %cst_9 = arith.constant dense<0.000000e+00> : vector<256xf32>
    %11 = vector.multi_reduction <add>, %10, %cst_9 [0] : vector<16x256xf32> to vector<256xf32>
    %12 = vector.shape_cast %11 : vector<256xf32> to vector<1x256xf32>
    %13 = vector.shape_cast %9 : vector<1x256xf32> to vector<1x256xf32>
    %14 = vector.broadcast %13 : vector<1x256xf32> to vector<8x256xf32>
    %c0_10 = arith.constant 0 : index
    %c0_11 = arith.constant 0 : index
    %c0_12 = arith.constant 0 : index
    %15 = vector.load %arg5[%c0_10, %c0_11, %c0_12] : memref<1x8x256xf32, #tpu.memory_space<vmem>>, vector<1x8x256xf32>
    %16 = vector.shape_cast %15 : vector<1x8x256xf32> to vector<8x256xf32>
    %17 = vector.shape_cast %14 : vector<8x256xf32> to vector<1x8x256xf32>
    tpu.vector_store %arg5[%c0_10, %c0_11, %c0_12], %17 {strides = array<i32>} : memref<1x8x256xf32, #tpu.memory_space<vmem>>, vector<1x8x256xf32>,
    %18 = vector.shape_cast %12 : vector<1x256xf32> to vector<1x256xf32>
    %19 = vector.broadcast %18 : vector<1x256xf32> to vector<8x256xf32>
    %c0_13 = arith.constant 0 : index
    %c0_14 = arith.constant 0 : index
    %c0_15 = arith.constant 0 : index
    %20 = vector.load %arg6[%c0_13, %c0_14, %c0_15] : memref<1x8x256xf32, #tpu.memory_space<vmem>>, vector<1x8x256xf32>
    %21 = vector.shape_cast %20 : vector<1x8x256xf32> to vector<8x256xf32>
    %22 = vector.shape_cast %19 : vector<8x256xf32> to vector<1x8x256xf32>
    tpu.vector_store %arg6[%c0_13, %c0_14, %c0_15], %22 {strides = array<i32>} : memref<1x8x256xf32, #tpu.memory_space<vmem>>, vector<1x8x256xf32>,
    return
  }
  func.func @transform_0(%arg0: i32, %arg1: i32) -> (i32, i32, i32) {
    %c0_i32 = arith.constant 0 : i32
    %c0_i32_0 = arith.constant 0 : i32
    return %arg0, %arg1, %c0_i32 : i32, i32, i32
  }
  func.func @transform_1(%arg0: i32, %arg1: i32) -> (i32, i32, i32) {
    %c0_i32 = arith.constant 0 : i32
    %c0_i32_0 = arith.constant 0 : i32
    %c0_i32_1 = arith.constant 0 : i32
    return %arg0, %c0_i32, %c0_i32_0 : i32, i32, i32
  }
  func.func @transform_2(%arg0: i32, %arg1: i32) -> (i32, i32, i32) {
    %c0_i32 = arith.constant 0 : i32
    %c0_i32_0 = arith.constant 0 : i32
    return %arg0, %arg1, %c0_i32 : i32, i32, i32
  }
  func.func @transform_3(%arg0: i32, %arg1: i32) -> (i32, i32, i32) {
    %c0_i32 = arith.constant 0 : i32
    %c0_i32_0 = arith.constant 0 : i32
    return %arg0, %arg1, %c0_i32 : i32, i32, i32
  }
  func.func @transform_4(%arg0: i32, %arg1: i32) -> (i32, i32, i32) {
    %c0_i32 = arith.constant 0 : i32
    %c0_i32_0 = arith.constant 0 : i32
    return %arg0, %arg1, %c0_i32 : i32, i32, i32
  }
}

module attributes {stable_mosaic.version = 11 : i64} {
  func.func @_scale_shift_relu_kernel(%arg0: i32, %arg1: i32, %arg2: memref<1x16x256xf32, #tpu.memory_space<vmem>>, %arg3: memref<1x256xf32, #tpu.memory_space<vmem>>, %arg4: memref<1x256xf32, #tpu.memory_space<vmem>>, %arg5: memref<1x16x256xbf16, #tpu.memory_space<vmem>>) attributes {dimension_semantics = [#tpu.dimension_semantics<parallel>, #tpu.dimension_semantics<parallel>], iteration_bounds = array<i64: 1, 1>, scalar_prefetch = 0 : i64, scratch_operands = 0 : i64, tpu.core_type = #tpu.core_type<tc>, window_params = [{transform_indices = @transform_0, window_bounds = array<i64: 1, 16, 256>}, {pipeline_mode = #tpu.pipeline_mode<synchronous>, transform_indices = @transform_1, window_bounds = array<i64: 1, 256>}, {pipeline_mode = #tpu.pipeline_mode<synchronous>, transform_indices = @transform_2, window_bounds = array<i64: 1, 256>}, {transform_indices = @transform_3, window_bounds = array<i64: 1, 16, 256>}]} {
    %c0 = arith.constant 0 : index
    %c0_0 = arith.constant 0 : index
    %c0_1 = arith.constant 0 : index
    %0 = vector.load %arg2[%c0, %c0_0, %c0_1] : memref<1x16x256xf32, #tpu.memory_space<vmem>>, vector<1x16x256xf32>
    %1 = vector.shape_cast %0 : vector<1x16x256xf32> to vector<16x256xf32>
    %c0_2 = arith.constant 0 : index
    %c0_3 = arith.constant 0 : index
    %2 = vector.load %arg3[%c0_2, %c0_3] : memref<1x256xf32, #tpu.memory_space<vmem>>, vector<1x256xf32>
    %3 = vector.broadcast %2 : vector<1x256xf32> to vector<16x256xf32>
    %4 = arith.mulf %1, %3 : vector<16x256xf32>
    %c0_4 = arith.constant 0 : index
    %c0_5 = arith.constant 0 : index
    %5 = vector.load %arg4[%c0_4, %c0_5] : memref<1x256xf32, #tpu.memory_space<vmem>>, vector<1x256xf32>
    %6 = vector.broadcast %5 : vector<1x256xf32> to vector<16x256xf32>
    %7 = arith.addf %4, %6 : vector<16x256xf32>
    %cst = arith.constant 0.000000e+00 : f32
    %8 = vector.broadcast %cst : f32 to vector<16x256xf32>
    %9 = arith.maximumf %7, %8 : vector<16x256xf32>
    %10 = arith.truncf %9 : vector<16x256xf32> to vector<16x256xbf16>
    %c0_6 = arith.constant 0 : index
    %c0_7 = arith.constant 0 : index
    %c0_8 = arith.constant 0 : index
    %11 = vector.load %arg5[%c0_6, %c0_7, %c0_8] : memref<1x16x256xbf16, #tpu.memory_space<vmem>>, vector<1x16x256xbf16>
    %12 = vector.shape_cast %11 : vector<1x16x256xbf16> to vector<16x256xbf16>
    %13 = vector.shape_cast %10 : vector<16x256xbf16> to vector<1x16x256xbf16>
    tpu.vector_store %arg5[%c0_6, %c0_7, %c0_8], %13 {strides = array<i32>} : memref<1x16x256xbf16, #tpu.memory_space<vmem>>, vector<1x16x256xbf16>,
    return
  }
  func.func @transform_0(%arg0: i32, %arg1: i32) -> (i32, i32, i32) {
    %c0_i32 = arith.constant 0 : i32
    %c0_i32_0 = arith.constant 0 : i32
    return %arg0, %arg1, %c0_i32 : i32, i32, i32
  }
  func.func @transform_1(%arg0: i32, %arg1: i32) -> (i32, i32) {
    %c0_i32 = arith.constant 0 : i32
    %c0_i32_0 = arith.constant 0 : i32
    %c0_i32_1 = arith.constant 0 : i32
    return %c0_i32, %c0_i32_0 : i32, i32
  }
  func.func @transform_2(%arg0: i32, %arg1: i32) -> (i32, i32) {
    %c0_i32 = arith.constant 0 : i32
    %c0_i32_0 = arith.constant 0 : i32
    %c0_i32_1 = arith.constant 0 : i32
    return %c0_i32, %c0_i32_0 : i32, i32
  }
  func.func @transform_3(%arg0: i32, %arg1: i32) -> (i32, i32, i32) {
    %c0_i32 = arith.constant 0 : i32
    %c0_i32_0 = arith.constant 0 : i32
    return %arg0, %arg1, %c0_i32 : i32, i32, i32
  }
}

module attributes {stable_mosaic.version = 11 : i64} {
  func.func @_matmul_stats_kernel(%arg0: i32, %arg1: i32, %arg2: memref<1x32x64xbf16, #tpu.memory_space<vmem>>, %arg3: memref<1x64x8xbf16, #tpu.memory_space<vmem>>, %arg4: memref<1x32x8xf32, #tpu.memory_space<vmem>>, %arg5: memref<1x8x8xf32, #tpu.memory_space<vmem>>, %arg6: memref<1x8x8xf32, #tpu.memory_space<vmem>>) attributes {dimension_semantics = [#tpu.dimension_semantics<parallel>, #tpu.dimension_semantics<parallel>], iteration_bounds = array<i64: 4, 1>, scalar_prefetch = 0 : i64, scratch_operands = 0 : i64, tpu.core_type = #tpu.core_type<tc>, window_params = [{transform_indices = @transform_0, window_bounds = array<i64: 1, 32, 64>}, {transform_indices = @transform_1, window_bounds = array<i64: 1, 64, 8>}, {transform_indices = @transform_2, window_bounds = array<i64: 1, 32, 8>}, {transform_indices = @transform_3, window_bounds = array<i64: 1, 8, 8>}, {transform_indices = @transform_4, window_bounds = array<i64: 1, 8, 8>}]} {
    %c0 = arith.constant 0 : index
    %c0_0 = arith.constant 0 : index
    %c0_1 = arith.constant 0 : index
    %0 = vector.load %arg2[%c0, %c0_0, %c0_1] : memref<1x32x64xbf16, #tpu.memory_space<vmem>>, vector<1x32x64xbf16>
    %1 = vector.shape_cast %0 : vector<1x32x64xbf16> to vector<32x64xbf16>
    %c0_2 = arith.constant 0 : index
    %c0_3 = arith.constant 0 : index
    %c0_4 = arith.constant 0 : index
    %2 = vector.load %arg3[%c0_2, %c0_3, %c0_4] : memref<1x64x8xbf16, #tpu.memory_space<vmem>>, vector<1x64x8xbf16>
    %3 = vector.shape_cast %2 : vector<1x64x8xbf16> to vector<64x8xbf16>
    %cst = arith.constant dense<0.000000e+00> : vector<32x8xf32>
    %4 = tpu.matmul %1, %3, %cst {dimension_numbers = #tpu.dot_dimension_numbers<[1], [0], [0], [1], [0, 0, 1, 1], [], []>} : vector<32x64xbf16>, vector<64x8xbf16>, vector<32x8xf32> -> vector<32x8xf32>
    %c0_5 = arith.constant 0 : index
    %c0_6 = arith.constant 0 : index
    %c0_7 = arith.constant 0 : index
    %5 = vector.load %arg4[%c0_5, %c0_6, %c0_7] : memref<1x32x8xf32, #tpu.memory_space<vmem>>, vector<1x32x8xf32>
    %6 = vector.shape_cast %5 : vector<1x32x8xf32> to vector<32x8xf32>
    %7 = vector.shape_cast %4 : vector<32x8xf32> to vector<1x32x8xf32>
    tpu.vector_store %arg4[%c0_5, %c0_6, %c0_7], %7 {strides = array<i32>} : memref<1x32x8xf32, #tpu.memory_space<vmem>>, vector<1x32x8xf32>,
    %cst_8 = arith.constant dense<0.000000e+00> : vector<8xf32>
    %8 = vector.multi_reduction <add>, %4, %cst_8 [0] : vector<32x8xf32> to vector<8xf32>
    %9 = vector.shape_cast %8 : vector<8xf32> to vector<1x8xf32>
    %10 = arith.mulf %4, %4 : vector<32x8xf32>
    %cst_9 = arith.constant dense<0.000000e+00> : vector<8xf32>
    %11 = vector.multi_reduction <add>, %10, %cst_9 [0] : vector<32x8xf32> to vector<8xf32>
    %12 = vector.shape_cast %11 : vector<8xf32> to vector<1x8xf32>
    %13 = vector.shape_cast %9 : vector<1x8xf32> to vector<1x8xf32>
    %14 = vector.broadcast %13 : vector<1x8xf32> to vector<8x8xf32>
    %c0_10 = arith.constant 0 : index
    %c0_11 = arith.constant 0 : index
    %c0_12 = arith.constant 0 : index
    %15 = vector.load %arg5[%c0_10, %c0_11, %c0_12] : memref<1x8x8xf32, #tpu.memory_space<vmem>>, vector<1x8x8xf32>
    %16 = vector.shape_cast %15 : vector<1x8x8xf32> to vector<8x8xf32>
    %17 = vector.shape_cast %14 : vector<8x8xf32> to vector<1x8x8xf32>
    tpu.vector_store %arg5[%c0_10, %c0_11, %c0_12], %17 {strides = array<i32>} : memref<1x8x8xf32, #tpu.memory_space<vmem>>, vector<1x8x8xf32>,
    %18 = vector.shape_cast %12 : vector<1x8xf32> to vector<1x8xf32>
    %19 = vector.broadcast %18 : vector<1x8xf32> to vector<8x8xf32>
    %c0_13 = arith.constant 0 : index
    %c0_14 = arith.constant 0 : index
    %c0_15 = arith.constant 0 : index
    %20 = vector.load %arg6[%c0_13, %c0_14, %c0_15] : memref<1x8x8xf32, #tpu.memory_space<vmem>>, vector<1x8x8xf32>
    %21 = vector.shape_cast %20 : vector<1x8x8xf32> to vector<8x8xf32>
    %22 = vector.shape_cast %19 : vector<8x8xf32> to vector<1x8x8xf32>
    tpu.vector_store %arg6[%c0_13, %c0_14, %c0_15], %22 {strides = array<i32>} : memref<1x8x8xf32, #tpu.memory_space<vmem>>, vector<1x8x8xf32>,
    return
  }
  func.func @transform_0(%arg0: i32, %arg1: i32) -> (i32, i32, i32) {
    %c0_i32 = arith.constant 0 : i32
    %c0_i32_0 = arith.constant 0 : i32
    return %arg0, %arg1, %c0_i32 : i32, i32, i32
  }
  func.func @transform_1(%arg0: i32, %arg1: i32) -> (i32, i32, i32) {
    %c0_i32 = arith.constant 0 : i32
    %c0_i32_0 = arith.constant 0 : i32
    %c0_i32_1 = arith.constant 0 : i32
    return %arg0, %c0_i32, %c0_i32_0 : i32, i32, i32
  }
  func.func @transform_2(%arg0: i32, %arg1: i32) -> (i32, i32, i32) {
    %c0_i32 = arith.constant 0 : i32
    %c0_i32_0 = arith.constant 0 : i32
    return %arg0, %arg1, %c0_i32 : i32, i32, i32
  }
  func.func @transform_3(%arg0: i32, %arg1: i32) -> (i32, i32, i32) {
    %c0_i32 = arith.constant 0 : i32
    %c0_i32_0 = arith.constant 0 : i32
    return %arg0, %arg1, %c0_i32 : i32, i32, i32
  }
  func.func @transform_4(%arg0: i32, %arg1: i32) -> (i32, i32, i32) {
    %c0_i32 = arith.constant 0 : i32
    %c0_i32_0 = arith.constant 0 : i32
    return %arg0, %arg1, %c0_i32 : i32, i32, i32
  }
}

module attributes {stable_mosaic.version = 11 : i64} {
  func.func @_scale_shift_relu_kernel(%arg0: i32, %arg1: i32, %arg2: memref<1x32x8xf32, #tpu.memory_space<vmem>>, %arg3: memref<1x8xf32, #tpu.memory_space<vmem>>, %arg4: memref<1x8xf32, #tpu.memory_space<vmem>>, %arg5: memref<1x32x8xbf16, #tpu.memory_space<vmem>>) attributes {dimension_semantics = [#tpu.dimension_semantics<parallel>, #tpu.dimension_semantics<parallel>], iteration_bounds = array<i64: 4, 1>, scalar_prefetch = 0 : i64, scratch_operands = 0 : i64, tpu.core_type = #tpu.core_type<tc>, window_params = [{transform_indices = @transform_0, window_bounds = array<i64: 1, 32, 8>}, {pipeline_mode = #tpu.pipeline_mode<synchronous>, transform_indices = @transform_1, window_bounds = array<i64: 1, 8>}, {pipeline_mode = #tpu.pipeline_mode<synchronous>, transform_indices = @transform_2, window_bounds = array<i64: 1, 8>}, {transform_indices = @transform_3, window_bounds = array<i64: 1, 32, 8>}]} {
    %c0 = arith.constant 0 : index
    %c0_0 = arith.constant 0 : index
    %c0_1 = arith.constant 0 : index
    %0 = vector.load %arg2[%c0, %c0_0, %c0_1] : memref<1x32x8xf32, #tpu.memory_space<vmem>>, vector<1x32x8xf32>
    %1 = vector.shape_cast %0 : vector<1x32x8xf32> to vector<32x8xf32>
    %c0_2 = arith.constant 0 : index
    %c0_3 = arith.constant 0 : index
    %2 = vector.load %arg3[%c0_2, %c0_3] : memref<1x8xf32, #tpu.memory_space<vmem>>, vector<1x8xf32>
    %3 = vector.broadcast %2 : vector<1x8xf32> to vector<32x8xf32>
    %4 = arith.mulf %1, %3 : vector<32x8xf32>
    %c0_4 = arith.constant 0 : index
    %c0_5 = arith.constant 0 : index
    %5 = vector.load %arg4[%c0_4, %c0_5] : memref<1x8xf32, #tpu.memory_space<vmem>>, vector<1x8xf32>
    %6 = vector.broadcast %5 : vector<1x8xf32> to vector<32x8xf32>
    %7 = arith.addf %4, %6 : vector<32x8xf32>
    %cst = arith.constant 0.000000e+00 : f32
    %8 = vector.broadcast %cst : f32 to vector<32x8xf32>
    %9 = arith.maximumf %7, %8 : vector<32x8xf32>
    %10 = arith.truncf %9 : vector<32x8xf32> to vector<32x8xbf16>
    %c0_6 = arith.constant 0 : index
    %c0_7 = arith.constant 0 : index
    %c0_8 = arith.constant 0 : index
    %11 = vector.load %arg5[%c0_6, %c0_7, %c0_8] : memref<1x32x8xbf16, #tpu.memory_space<vmem>>, vector<1x32x8xbf16>
    %12 = vector.shape_cast %11 : vector<1x32x8xbf16> to vector<32x8xbf16>
    %13 = vector.shape_cast %10 : vector<32x8xbf16> to vector<1x32x8xbf16>
    tpu.vector_store %arg5[%c0_6, %c0_7, %c0_8], %13 {strides = array<i32>} : memref<1x32x8xbf16, #tpu.memory_space<vmem>>, vector<1x32x8xbf16>,
    return
  }
  func.func @transform_0(%arg0: i32, %arg1: i32) -> (i32, i32, i32) {
    %c0_i32 = arith.constant 0 : i32
    %c0_i32_0 = arith.constant 0 : i32
    return %arg0, %arg1, %c0_i32 : i32, i32, i32
  }
  func.func @transform_1(%arg0: i32, %arg1: i32) -> (i32, i32) {
    %c0_i32 = arith.constant 0 : i32
    %c0_i32_0 = arith.constant 0 : i32
    %c0_i32_1 = arith.constant 0 : i32
    return %c0_i32, %c0_i32_0 : i32, i32
  }
  func.func @transform_2(%arg0: i32, %arg1: i32) -> (i32, i32) {
    %c0_i32 = arith.constant 0 : i32
    %c0_i32_0 = arith.constant 0 : i32
    %c0_i32_1 = arith.constant 0 : i32
    return %c0_i32, %c0_i32_0 : i32, i32
  }
  func.func @transform_3(%arg0: i32, %arg1: i32) -> (i32, i32, i32) {
    %c0_i32 = arith.constant 0 : i32
    %c0_i32_0 = arith.constant 0 : i32
    return %arg0, %arg1, %c0_i32 : i32, i32, i32
  }
}

module attributes {stable_mosaic.version = 11 : i64} {
  func.func @_matmul_tanh_kernel(%arg0: i32, %arg1: i32, %arg2: memref<1x8x32xbf16, #tpu.memory_space<vmem>>, %arg3: memref<1x32x128xbf16, #tpu.memory_space<vmem>>, %arg4: memref<1x8x128xf32, #tpu.memory_space<vmem>>) attributes {dimension_semantics = [#tpu.dimension_semantics<parallel>, #tpu.dimension_semantics<parallel>], iteration_bounds = array<i64: 4, 1>, scalar_prefetch = 0 : i64, scratch_operands = 0 : i64, tpu.core_type = #tpu.core_type<tc>, window_params = [{transform_indices = @transform_0, window_bounds = array<i64: 1, 8, 32>}, {transform_indices = @transform_1, window_bounds = array<i64: 1, 32, 128>}, {transform_indices = @transform_2, window_bounds = array<i64: 1, 8, 128>}]} {
    %c0 = arith.constant 0 : index
    %c0_0 = arith.constant 0 : index
    %c0_1 = arith.constant 0 : index
    %0 = vector.load %arg2[%c0, %c0_0, %c0_1] : memref<1x8x32xbf16, #tpu.memory_space<vmem>>, vector<1x8x32xbf16>
    %1 = vector.shape_cast %0 : vector<1x8x32xbf16> to vector<8x32xbf16>
    %c0_2 = arith.constant 0 : index
    %c0_3 = arith.constant 0 : index
    %c0_4 = arith.constant 0 : index
    %2 = vector.load %arg3[%c0_2, %c0_3, %c0_4] : memref<1x32x128xbf16, #tpu.memory_space<vmem>>, vector<1x32x128xbf16>
    %3 = vector.shape_cast %2 : vector<1x32x128xbf16> to vector<32x128xbf16>
    %cst = arith.constant dense<0.000000e+00> : vector<8x128xf32>
    %4 = tpu.matmul %1, %3, %cst {dimension_numbers = #tpu.dot_dimension_numbers<[1], [0], [0], [1], [0, 0, 1, 1], [], []>} : vector<8x32xbf16>, vector<32x128xbf16>, vector<8x128xf32> -> vector<8x128xf32>
    %5 = math.tanh %4 : vector<8x128xf32>
    %c0_5 = arith.constant 0 : index
    %c0_6 = arith.constant 0 : index
    %c0_7 = arith.constant 0 : index
    %6 = vector.load %arg4[%c0_5, %c0_6, %c0_7] : memref<1x8x128xf32, #tpu.memory_space<vmem>>, vector<1x8x128xf32>
    %7 = vector.shape_cast %6 : vector<1x8x128xf32> to vector<8x128xf32>
    %8 = vector.shape_cast %5 : vector<8x128xf32> to vector<1x8x128xf32>
    tpu.vector_store %arg4[%c0_5, %c0_6, %c0_7], %8 {strides = array<i32>} : memref<1x8x128xf32, #tpu.memory_space<vmem>>, vector<1x8x128xf32>,
    return
  }
  func.func @transform_0(%arg0: i32, %arg1: i32) -> (i32, i32, i32) {
    %c0_i32 = arith.constant 0 : i32
    %c0_i32_0 = arith.constant 0 : i32
    %c0_i32_1 = arith.constant 0 : i32
    return %arg0, %c0_i32, %c0_i32_0 : i32, i32, i32
  }
  func.func @transform_1(%arg0: i32, %arg1: i32) -> (i32, i32, i32) {
    %c0_i32 = arith.constant 0 : i32
    %c0_i32_0 = arith.constant 0 : i32
    return %arg0, %c0_i32, %arg1 : i32, i32, i32
  }
  func.func @transform_2(%arg0: i32, %arg1: i32) -> (i32, i32, i32) {
    %c0_i32 = arith.constant 0 : i32
    %c0_i32_0 = arith.constant 0 : i32
    return %arg0, %c0_i32, %arg1 : i32, i32, i32
  }
}

</mosaic_0001>

<bundles_post_ra>
// kernel: tile.18
= control target key start
LH: loop header
LB: loop body
LE: loop exit
PB: predicated region body
PF: predicated region fallthrough
CT: control target
= control target key end

     0   :  { %s28_s0 = inlined_call_operand.vmem [shape: f32[16], index: 0, kind: input, shape index: {}]   ;;  %s29_s1 = inlined_call_operand.vmem [shape: f32[16,16], index: 1, kind: output, shape index: {}]  }
   0x1   :  { %v4_v0 = vld [vmem:[%s28_s0] ss:$0 sm:$0xff] }
   0x2   :  { %5 = vst [vmem:[%s29_s1] sm:$0xff] %v4_v0 }
   0x3   :  { %8 = vst [vmem:[%s29_s1 + $0x8] sm:$0xff] %v4_v0 }

// kernel: tile.19
= control target key start
LH: loop header
LB: loop body
LE: loop exit
PB: predicated region body
PF: predicated region fallthrough
CT: control target
= control target key end

     0   :  { %s7_s6 = smov 3  ;;  %s21_s9 = smov 3  ;;  %vm4_vm0 = vcmask 130048   ;;  %vm11_vm1 = vcmask 1048448   ;;  %vm18_vm2 = vcmask 917248   ;;  %vm25_vm3 = vcmask 786048   ;;  %s129_s0 = inlined_call_operand.vmem [shape: f32[16,16], index: 0, kind: input, shape index: {}]   ;;  %s130_s1 = inlined_call_operand.vmem [shape: f32[1,256], index: 1, kind: output, shape index: {}]  }
   0x1   :  { %v67_v0 = vld [vmem:[%s129_s0 + $0x7] ss:$8 sm:%s7_s6]   ;;  %s82_s10 = smov 112   ;;  %v69_v1 = vld [vmem:[%s129_s0 + $0x5] ss:$8 sm:%s21_s9]   ;;  %s83_s13 = smov 80  }
   0x2   :  { %9 = vrot.lane.b32.xlu0 %v67_v0, %s82_s10  ;;  %23 = vrot.lane.b32.xlu1 %v69_v1, %s83_s13  ;;  %s14_s14 = smov 3  ;;  %s28_s15 = smov 3  ;;  %vm32_vm4 = vcmask 654848   ;;  %vm39_vm5 = vcmask 523648   ;;  %vm46_vm6 = vcmask 392448   ;;  %vm53_vm7 = vcmask 261248  }
   0x3   :  { %s35_s16 = smov 3  ;;  %v68_v3 = vld [vmem:[%s129_s0 + $0x6] ss:$8 sm:%s14_s14]   ;;  %s84_s21 = smov 48   ;;  %v70_v4 = vld [vmem:[%s129_s0 + $0x4] ss:$8 sm:%s28_s15]  }
   0x4   :  { %v71_v2 = vld [vmem:[%s129_s0 + $0x3] ss:$8 sm:%s35_s16]   ;;  %s42_s24 = smov 3  ;;  %s85_s25 = smov 96  }
   0x5   :  { %37 = vrot.lane.b32.xlu2 %v71_v2, %s84_s21  ;;  %s86_s26 = smov 64   ;;  %s49_s27 = smov 3  ;;  %v72_v5 = vld [vmem:[%s129_s0 + $0x2] ss:$8 sm:%s42_s24]  }
   0x6   :  { %v73_v6 = vld [vmem:[%s129_s0 + $0x1] ss:$8 sm:%s49_s27]   ;;  %s87_s3 = smov 32   ;;  %s88_s4 = smov 16  }
   0x7   :  { %s2_s5 = smov 3 }
   0x8   :  { %v3_v7 = vld [vmem:[%s129_s0] ss:$8 sm:%s2_s5]  }
   0x9   :  { %5 = vst.msk [vmem:[#allocation0] ss:$8 sm:$0x3] %vm4_vm0, %v3_v7  }
   0xa   :  { %16 = vrot.lane.b32.xlu0 %v68_v3, %s85_s25  ;;  %30 = vrot.lane.b32.xlu1 %v70_v4, %s86_s26 }
   0xd   :  { %44 = vrot.lane.b32.xlu2 %v72_v5, %s87_s3 }
  0x12   :  { %51 = vrot.lane.b32.xlu0 %v73_v6, %s88_s4 }
  0x5f   :  { %v38_v8 = vpop.permute.xlu2 %37  }
  0x67   :  { %v45_v9 = vpop.permute.xlu2 %44  }
  0x74   :  { %v10_v10 = vpop.permute.xlu0 %9   ;;  %v24_v11 = vpop.permute.xlu1 %23  }
  0x75   :  { %12 = vst.msk [vmem:[#allocation0] ss:$8 sm:$0x3] %vm11_vm1, %v10_v10  }
  0x7c   :  { %v17_v12 = vpop.permute.xlu0 %16   ;;  %v31_v13 = vpop.permute.xlu1 %30  }
  0x7d   :  { %19 = vst.msk [vmem:[#allocation0] ss:$8 sm:$0x3] %vm18_vm2, %v17_v12  }
  0x7e   :  { %26 = vst.msk [vmem:[#allocation0] ss:$8 sm:$0x3] %vm25_vm3, %v24_v11  }
  0x7f   :  { %33 = vst.msk [vmem:[#allocation0] ss:$8 sm:$0x3] %vm32_vm4, %v31_v13  }
  0x80   :  { %40 = vst.msk [vmem:[#allocation0] ss:$8 sm:$0x3] %vm39_vm5, %v38_v8  }
  0x81   :  { %47 = vst.msk [vmem:[#allocation0] ss:$8 sm:$0x3] %vm46_vm6, %v45_v9  }
  0x84   :  { %v52_v14 = vpop.permute.xlu0 %51  }
  0x85   :  { %54 = vst.msk [vmem:[#allocation0] ss:$8 sm:$0x3] %vm53_vm7, %v52_v14  }
  0x8c   :  { %v57_v15 = vld [vmem:[#allocation0] sm:$0x1]  ;;  %v62_v16 = vld [vmem:[#allocation0 + $0x8] sm:$0x1] }
  0x8d   :  { %60 = vst [vmem:[%s130_s1] sm:$0x1] %v57_v15 }
  0x8e   :  { %74 = vst [vmem:[%s130_s1 + $0x1] sm:$0x1] %v62_v16 }

// kernel: squeeze.1
= control target key start
LH: loop header
LB: loop body
LE: loop exit
PB: predicated region body
PF: predicated region fallthrough
CT: control target
= control target key end

     0   :  { %vm33_vm0 = vcmask 130048   ;;  %s172_s10 = smov 80   ;;  %s173_s11 = smov 48   ;;  %s236_s0 = inlined_call_operand.vmem [shape: bf16[1,2,256], index: 0, kind: input, shape index: {}]   ;;  %s237_s1 = inlined_call_operand.vmem [shape: bf16[2,4,4,16], index: 1, kind: output, shape index: {}]  }
   0x1   :  { %v156_v0 = vld [vmem:[%s236_s0 + $0x1] sm:$0x1]  ;;  %v28_v1 = vld [vmem:[%s236_s0] sm:$0x1]  ;;  %s171_s0 = smov 112   ;;  %s174_s12 = smov 96  }
   0x2   :  { %v15_v2 = vunpack.c.l.bf16 %v156_v0  ;;  %v29_v3 = vunpack.c.l.bf16 %v28_v1  ;;  %s175_s13 = smov 64   ;;  %s176_s14 = smov 32  }
   0x3   :  { %s177_s15 = smov 16  }
   0x4   :  { %18 = vst [vmem:[#allocation1 + $0x8] sm:$0x3] %v15_v2 }
   0x5   :  { %31 = vst [vmem:[#allocation1] sm:$0x3] %v29_v3 }
   0xb   :  { %v38_v6 = vld [vmem:[#allocation1 + $0x8] sm:$0x3]  }
   0xc   :  { %v44_v4 = vld.sshfl [vmem:[#allocation1] sm:$0xff pattern:$0x99999180]   ;;  %41 = vst.msk [vmem:[#allocation0 + $0x10] sm:$0x1] %vm33_vm0, %v38_v6  }
   0xd   :  { %v32_v5 = vld [vmem:[#allocation1] sm:$0x3]   ;;  %45 = vrot.lane.b32.xlu0 %v44_v4, %s171_s0  ;;  %61 = vrot.lane.b32.xlu1 %v44_v4, %s172_s10  ;;  %43 = vst.msk [vmem:[#allocation0 + $0x2f] sm:$0x2] %vm33_vm0, %v38_v6  }
   0xe   :  { %34 = vst.msk [vmem:[#allocation0] sm:$0x1] %vm33_vm0, %v32_v5   ;;  %77 = vrot.lane.b32.xlu2 %v44_v4, %s173_s11 }
   0xf   :  { %36 = vst.msk [vmem:[#allocation0 + $0x1f] sm:$0x2] %vm33_vm0, %v32_v5  }
  0x15   :  { %53 = vrot.lane.b32.xlu0 %v44_v4, %s174_s12  ;;  %69 = vrot.lane.b32.xlu1 %v44_v4, %s175_s13 }
  0x16   :  { %85 = vrot.lane.b32.xlu2 %v44_v4, %s176_s14 }
  0x1d   :  { %93 = vrot.lane.b32.xlu0 %v44_v4, %s177_s15 }
  0x68   :  { %v78_v7 = vpop.permute.xlu2 %77  }
  0x69   :  { %81 = vst.msk [vmem:[#allocation0 + $0x9] ss:$16 sm:$0x3] %vm33_vm0, %v78_v7  }
  0x6a   :  { %83 = vst.msk [vmem:[#allocation0 + $0x9] ss:$16 sm:$0xc] %vm33_vm0, %v78_v7  }
  0x70   :  { %v86_v8 = vpop.permute.xlu2 %85  }
  0x71   :  { %89 = vst.msk [vmem:[#allocation0 + $0xa] ss:$16 sm:$0x3] %vm33_vm0, %v86_v8  }
  0x72   :  { %91 = vst.msk [vmem:[#allocation0 + $0xa] ss:$16 sm:$0xc] %vm33_vm0, %v86_v8  }
  0x7f   :  { %v46_v9 = vpop.permute.xlu0 %45   ;;  %v62_v10 = vpop.permute.xlu1 %61  }
  0x80   :  { %49 = vst.msk [vmem:[#allocation0 + $0x1] ss:$16 sm:$0x3] %vm33_vm0, %v46_v9  }
  0x81   :  { %51 = vst.msk [vmem:[#allocation0 + $0x1] ss:$16 sm:$0xc] %vm33_vm0, %v46_v9  }
  0x82   :  { %65 = vst.msk [vmem:[#allocation0 + $0x3] ss:$16 sm:$0x3] %vm33_vm0, %v62_v10  }
  0x83   :  { %67 = vst.msk [vmem:[#allocation0 + $0x3] ss:$16 sm:$0xc] %vm33_vm0, %v62_v10  }
  0x87   :  { %v54_v11 = vpop.permute.xlu0 %53   ;;  %v70_v12 = vpop.permute.xlu1 %69  }
  0x88   :  { %57 = vst.msk [vmem:[#allocation0 + $0x2] ss:$16 sm:$0x3] %vm33_vm0, %v54_v11  }
  0x89   :  { %59 = vst.msk [vmem:[#allocation0 + $0x2] ss:$16 sm:$0xc] %vm33_vm0, %v54_v11  }
  0x8a   :  { %73 = vst.msk [vmem:[#allocation0 + $0x8] ss:$16 sm:$0x3] %vm33_vm0, %v70_v12  }
  0x8b   :  { %75 = vst.msk [vmem:[#allocation0 + $0x8] ss:$16 sm:$0xc] %vm33_vm0, %v70_v12  }
  0x8f   :  { %v102_v13 = vld [vmem:[#allocation0] sm:$0xf]  ;;  %v115_v14 = vld [vmem:[#allocation0 + $0x10] sm:$0xf]  ;;  %v94_v15 = vpop.permute.xlu0 %93  }
  0x90   :  { %v129_v16 = vld [vmem:[#allocation0 + $0x20] sm:$0xf]  ;;  %v143_v17 = vld [vmem:[#allocation0 + $0x30] sm:$0xf]  ;;  %v103_v18 = vpack.c.bf16 0.0, %v102_v13  ;;  %v116_v19 = vpack.c.bf16 0.0, %v115_v14 }
  0x91   :  { %v130_v20 = vpack.c.bf16 0.0, %v129_v16  ;;  %v144_v21 = vpack.c.bf16 0.0, %v143_v17  ;;  %97 = vst.msk [vmem:[#allocation0 + $0xb] ss:$16 sm:$0x3] %vm33_vm0, %v94_v15  }
  0x92   :  { %106 = vst [vmem:[%s237_s1] sm:$0x3] %v103_v18 }
  0x93   :  { %158 = vst [vmem:[%s237_s1 + $0x4] sm:$0x3] %v116_v19 }
  0x94   :  { %160 = vst [vmem:[%s237_s1 + $0x8] sm:$0x3] %v130_v20 }
  0x95   :  { %162 = vst [vmem:[%s237_s1 + $0xc] sm:$0x3] %v144_v21 }
  0x96   :  { %99 = vst.msk [vmem:[#allocation0 + $0xb] ss:$16 sm:$0xc] %vm33_vm0, %v94_v15  }
  0x98   :  { %v108_v22 = vld [vmem:[#allocation0 + $0x8] sm:$0xf]  ;;  %v122_v23 = vld [vmem:[#allocation0 + $0x18] sm:$0xf] }
  0x99   :  { %v109_v24 = vpack.c.bf16 0.0, %v108_v22  ;;  %v123_v25 = vpack.c.bf16 0.0, %v122_v23 }
  0x9b   :  { %157 = vst [vmem:[%s237_s1 + $0x2] sm:$0x3] %v109_v24 }
  0x9c   :  { %159 = vst [vmem:[%s237_s1 + $0x6] sm:$0x3] %v123_v25 }
  0x9d   :  { %v136_v26 = vld [vmem:[#allocation0 + $0x28] sm:$0xf]  ;;  %v150_v27 = vld [vmem:[#allocation0 + $0x38] sm:$0xf] }
  0x9e   :  { %v137_v28 = vpack.c.bf16 0.0, %v136_v26  ;;  %v151_v29 = vpack.c.bf16 0.0, %v150_v27 }
  0xa0   :  { %161 = vst [vmem:[%s237_s1 + $0xa] sm:$0x3] %v137_v28 }
  0xa1   :  { %163 = vst [vmem:[%s237_s1 + $0xe] sm:$0x3] %v151_v29 }

// kernel: a_call__.5
= control target key start
LH: loop header
LB: loop body
LE: loop exit
PB: predicated region body
PF: predicated region fallthrough
CT: control target
= control target key end

     0   :  { %vm32_vm0 = vcmask 1043456   ;;  %vm28_vm1 = vcmask 64512   ;;  %s181_s1 = inlined_call_operand.vmem [shape: bf16[1,8,256], index: 1, kind: input, shape index: {}]   ;;  %s182_s0 = inlined_call_operand.vmem [shape: bf16[1,16,8], index: 0, kind: input, shape index: {}]   ;;  %s183_s2 = inlined_call_operand.vmem [shape: f32[1,16,256], index: 2, kind: output, shape index: {0}]   ;;  %s184_s3 = inlined_call_operand.vmem [shape: f32[1,8,256], index: 3, kind: output, shape index: {1}]   ;;  %s185_s4 = inlined_call_operand.vmem [shape: f32[1,8,256], index: 4, kind: output, shape index: {2}]  }
   0x1   :  { %v17_v0 = vld [vmem:[%s181_s1] sm:$0xff] }
   0x2   :  { %v24_v1 = vunpack.c.l.b16 %v17_v0  ;;  %v25_v2 = vunpack.c.h.b16 %v17_v0  ;;  %v125_v7 = vld [vmem:[%s182_s0] sm:$0xff] }
   0x4   :  { %v26_v3 = vpack.c.b16 %v24_v1, %v24_v1  ;;  %v27_v4 = vpack.c.b16 %v25_v2, %v25_v2 }
   0x6   :  { %v34_v5 = vsel %vm32_vm0, %v26_v3, 0  ;;  %v37_v6 = vsel %vm32_vm0, %v27_v4, 0 }
   0x7   :  { %46 = vmatpush.bf16.msra.mxu0 %v34_v5  ;;  %60 = vmatpush.bf16.msra.mxu1 %v37_v6 }
   0xa   :  { %123 = vmatmul.msk.bf16.vlgmr.msra.gmra.mxu0 %vm28_vm1, %v125_v7  ;;  %124 = vmatmul.msk.bf16.vlgmr.msra.gmra.mxu1 %vm28_vm1, %v125_v7 }
  0x87   :  { %v48_v8 = vpop.f32.mrf.mxu0  ;;  %v62_v9 = vpop.f32.mrf.mxu1 }
  0x88   :  { %67 = vst [vmem:[%s183_s2] sm:$0xff] %v48_v8  ;;  %v85_v10 = vmul.f32 %v48_v8, %v48_v8  ;;  %v86_v11 = vmul.f32 %v62_v9, %v62_v9 }
  0x89   :  { %68 = vst [vmem:[%s183_s2 + $0x8] sm:$0xff] %v62_v9 }
  0x8f   :  { %v50_v12 = vpop.f32.mrf.mxu0  ;;  %v64_v13 = vpop.f32.mrf.mxu1 }
  0x90   :  { %69 = vst [vmem:[%s183_s2 + $0x10] sm:$0xff] %v50_v12  ;;  %v71_v14 = vadd.f32 %v50_v12, %v48_v8  ;;  %v87_v15 = vmul.f32 %v50_v12, %v50_v12  ;;  %v78_v16 = vadd.f32 %v64_v13, %v62_v9  ;;  %v88_v17 = vmul.f32 %v64_v13, %v64_v13 }
  0x91   :  { %70 = vst [vmem:[%s183_s2 + $0x18] sm:$0xff] %v64_v13 }
  0x92   :  { %v72_v18 = vrot.slane %v71_v14, 4  ;;  %v89_v19 = vadd.f32 %v87_v15, %v85_v10  ;;  %v79_v20 = vrot.slane %v78_v16, 4  ;;  %v96_v21 = vadd.f32 %v88_v17, %v86_v11 }
  0x94   :  { %v73_v22 = vadd.f32 %v72_v18, %v71_v14  ;;  %v90_v23 = vrot.slane %v89_v19, 4  ;;  %v80_v24 = vadd.f32 %v79_v20, %v78_v16  ;;  %v97_v25 = vrot.slane %v96_v21, 4 }
  0x96   :  { %v74_v26 = vrot.slane %v73_v22, 2  ;;  %v91_v27 = vadd.f32 %v90_v23, %v89_v19  ;;  %v81_v28 = vrot.slane %v80_v24, 2  ;;  %v98_v29 = vadd.f32 %v97_v25, %v96_v21 }
  0x98   :  { %v75_v30 = vadd.f32 %v74_v26, %v73_v22  ;;  %v92_v31 = vrot.slane %v91_v27, 2  ;;  %v82_v32 = vadd.f32 %v81_v28, %v80_v24  ;;  %v99_v33 = vrot.slane %v98_v29, 2 }
  0x9a   :  { %v76_v34 = vrot.slane %v75_v30, 1  ;;  %v93_v35 = vadd.f32 %v92_v31, %v91_v27  ;;  %v83_v36 = vrot.slane %v82_v32, 1  ;;  %v100_v37 = vadd.f32 %v99_v33, %v98_v29 }
  0x9c   :  { %v77_v38 = vadd.f32 %v76_v34, %v75_v30  ;;  %v94_v39 = vrot.slane %v93_v35, 1  ;;  %v84_v40 = vadd.f32 %v83_v36, %v82_v32  ;;  %v101_v41 = vrot.slane %v100_v37, 1 }
  0x9e   :  { %v95_v42 = vadd.f32 %v94_v39, %v93_v35  ;;  %103 = vst [vmem:[%s184_s3] sm:$0xff] %v77_v38  ;;  %v102_v43 = vadd.f32 %v101_v41, %v100_v37 }
  0x9f   :  { %104 = vst [vmem:[%s184_s3 + $0x8] sm:$0xff] %v84_v40 }
  0xa0   :  { %105 = vst [vmem:[%s185_s4] sm:$0xff] %v95_v42 }
  0xa1   :  { %106 = vst [vmem:[%s185_s4 + $0x8] sm:$0xff] %v102_v43 }

// kernel: a_call__.6
= control target key start
LH: loop header
LB: loop body
LE: loop exit
PB: predicated region body
PF: predicated region fallthrough
CT: control target
= control target key end

     0   :  { %s94_s0 = inlined_call_operand.vmem [shape: f32[1,16,256], index: 0, kind: input, shape index: {}]   ;;  %s95_s1 = inlined_call_operand.vmem [shape: f32[1,256], index: 1, kind: input, shape index: {}]   ;;  %s96_s2 = inlined_call_operand.vmem [shape: f32[1,256], index: 2, kind: input, shape index: {}]   ;;  %s97_s3 = inlined_call_operand.vmem [shape: bf16[1,16,256], index: 3, kind: output, shape index: {}]  }
   0x1   :  { %v14_v0 = vld [vmem:[%s94_s0] sm:$0xff]  ;;  %v15_v1 = vld [vmem:[%s94_s0 + $0x8] sm:$0xff]  ;;  %v16_v6 = vld [vmem:[%s94_s0 + $0x10] sm:$0xff] }
   0x2   :  { %v18_v2 = vld [vmem:[%s95_s1] sm:$0x3]  ;;  %v17_v7 = vld [vmem:[%s94_s0 + $0x18] sm:$0xff] }
   0x3   :  { %v20_v3 = vperm.slane %v18_v2, 0  ;;  %v21_v4 = vperm.slane %v18_v2, 1  ;;  %v28_v5 = vld [vmem:[%s96_s2] sm:$0x3] }
   0x4   :  { %v30_v8 = vperm.slane %v28_v5, 0  ;;  %v31_v9 = vperm.slane %v28_v5, 1 }
   0x5   :  { %v24_v10 = vmul.f32 %v20_v3, %v14_v0  ;;  %v25_v11 = vmul.f32 %v21_v4, %v15_v1  ;;  %v26_v12 = vmul.f32 %v20_v3, %v16_v6  ;;  %v27_v13 = vmul.f32 %v21_v4, %v17_v7 }
   0x7   :  { %v34_v14 = vadd.f32 %v30_v8, %v24_v10  ;;  %v35_v15 = vadd.f32 %v31_v9, %v25_v11  ;;  %v36_v16 = vadd.f32 %v30_v8, %v26_v12  ;;  %v37_v17 = vadd.f32 %v31_v9, %v27_v13 }
   0x9   :  { %v38_v18 = vmax.f32 %v34_v14, 0.0  ;;  %v39_v19 = vmax.f32 %v35_v15, 0.0  ;;  %v40_v20 = vmax.f32 %v36_v16, 0.0  ;;  %v41_v21 = vmax.f32 %v37_v17, 0.0 }
   0xb   :  { %v42_v22 = vpack.c.bf16 %v39_v19, %v38_v18  ;;  %v43_v23 = vpack.c.bf16 %v41_v21, %v40_v20 }
   0xd   :  { %44 = vst [vmem:[%s97_s3] sm:$0xff] %v42_v22 }
   0xe   :  { %45 = vst [vmem:[%s97_s3 + $0x8] sm:$0xff] %v43_v23 }

// kernel: a_call__.7
= control target key start
LH: loop header
LB: loop body
LE: loop exit
PB: predicated region body
PF: predicated region fallthrough
CT: control target
= control target key end

     0   :  { %s712_s15 = smov 0   ;;  %s714_s16 = smov 0   ;;  %s773_s0 = inlined_call_operand.vmem [shape: bf16[4,32,64], index: 0, kind: input, shape index: {}]   ;;  %s774_s1 = inlined_call_operand.vmem [shape: bf16[4,64,8], index: 1, kind: input, shape index: {}]   ;;  %s775_s2 = inlined_call_operand.vmem [shape: f32[4,32,8], index: 2, kind: output, shape index: {0}]   ;;  %s776_s3 = inlined_call_operand.vmem [shape: f32[4,8,8], index: 3, kind: output, shape index: {1}]   ;;  %s777_s4 = inlined_call_operand.vmem [shape: f32[4,8,8], index: 4, kind: output, shape index: {2}]  }
   0x1   :  { %s716_s17 = smov 0  }
   0x2 LB: > { %s27_s18 = sadd.s32 1, %s681_s16  ;;  %p589_p0 = scmp.ge.s32.totalorder %s685_s17, 1  ;;  %s685_s17 = sphi %s716_s17, %s15_s17   ;;  %s681_s16 = sphi %s714_s16, %s779_s16   ;;  %s677_s15 = sphi %s712_s15, %s778_s15  }
   0x3   : > { %p29_p1 = scmp.ge.s32.totalorder %s27_s18, 4  ;;  %p202_p2 = scmp.lt.s32.totalorder %s685_s17, 5 }
   0x5   : > { %s781_s18 = smov (%p29_p1, %s27_s18), 0  ;;  %p203_p3 = pnand %p589_p0, %p202_p2 }
   0x6   : > { %p256_p4 = scmp.lt.s32.totalorder (!%p203_p3), %s677_s15, 3 }
   0x7   : > { %206 = sbr.rel (%p203_p3) target bundleno = 187 (0xbb), region = 28 }
   0xc   : > { %s783_s15 = smov (!%p256_p4, %s677_s15), 3  ;;  %vm341_vm0 = vcmask 523264   ;;  %vm367_vm1 = vcmask 64512  }
   0xd   : > { %s627_s19 = sshll.u32 %s783_s15, 5  ;;  %s626_s23 = sshll.u32 %s783_s15, 4 }
   0xe   : > { %s269_s22 = scalar_lea.vmem %s774_s1, %s627_s19  ;;  %s263_s26 = scalar_lea.vmem %s773_s0, %s626_s23 }
   0xf   : > { %v634_v0 = vld [vmem:[%s269_s22 + $0x18] sm:$0xff]  ;;  %v633_v1 = vld [vmem:[%s269_s22 + $0x10] sm:$0xff]  ;;  %v632_v2 = vld [vmem:[%s269_s22 + $0x8] sm:$0xff]  ;;  %s278_s29 = scalar_lea.vmem %s775_s2, %s627_s19  ;;  %s596_s30 = sshll.u32 %s783_s15, 3 }
  0x10   : > { %352 = vmatpush.bf16.msra.mxu0 %v634_v0  ;;  %635 = vmatpush.bf16.msra.mxu1 %v634_v0  ;;  %v631_v3 = vld [vmem:[%s269_s22] sm:$0xff]  ;;  %v630_v5 = vld [vmem:[%s263_s26 + $0x8] sm:$0xff]  ;;  %s286_s7 = scalar_lea.vmem %s776_s3, %s596_s30  ;;  %s293_s10 = scalar_lea.vmem %s777_s4, %s596_s30 }
  0x11   : > { %v629_v4 = vld [vmem:[%s263_s26] sm:$0xff] }
  0x14   : > { %353 = vmatpush.bf16.msra.mxu0 %v633_v1  ;;  %636 = vmatpush.bf16.msra.mxu1 %v633_v1 }
  0x18   : > { %354 = vmatpush.bf16.msra.mxu0 %v632_v2  ;;  %637 = vmatpush.bf16.msra.mxu1 %v632_v2 }
  0x1c   : > { %355 = vmatpush.bf16.msra.mxu0 %v631_v3  ;;  %638 = vmatpush.bf16.msra.mxu1 %v631_v3 }
  0x1f   : > { %622 = vmatmul.msk.bf16.vlgmr.msra.gmra.mxu0 %vm341_vm0, %v629_v4  ;;  %623 = vmatmul.msk.bf16.vlgmr.msra.gmra.mxu1 %vm341_vm0, %v630_v5 }
  0x9c   : > { %v357_v6 = vpop.f32.mrf.mxu0  ;;  %v362_v7 = vpop.f32.mrf.mxu1 }
  0x9d   : > { %368 = vst.msk [vmem:[%s278_s29] sm:$0xff] %vm367_vm1, %v357_v6  ;;  %v385_v8 = vmul.f32 %v357_v6, %v357_v6  ;;  %v372_v11 = vsel %vm367_vm1, %v357_v6, 0.0  ;;  %v387_v12 = vmul.f32 %v362_v7, %v362_v7  ;;  %v375_v17 = vsel %vm367_vm1, %v362_v7, 0.0 }
  0x9e   : > { %370 = vst.msk [vmem:[%s278_s29 + $0x10] sm:$0xff] %vm367_vm1, %v362_v7 }
  0x9f   : > { %v389_v16 = vsel %vm367_vm1, %v385_v8, 0.0  ;;  %v392_v22 = vsel %vm367_vm1, %v387_v12, 0.0 }
  0xa4   : > { %v359_v9 = vpop.f32.mrf.mxu0  ;;  %v364_v10 = vpop.f32.mrf.mxu1 }
  0xa5   : > { %369 = vst.msk [vmem:[%s278_s29 + $0x8] sm:$0xff] %vm367_vm1, %v359_v9  ;;  %v373_v13 = vsel %vm367_vm1, %v359_v9, 0.0  ;;  %v386_v14 = vmul.f32 %v359_v9, %v359_v9  ;;  %v388_v19 = vmul.f32 %v364_v10, %v364_v10  ;;  %v377_v23 = vsel %vm367_vm1, %v364_v10, 0.0 }
  0xa6   : > { %v374_v15 = vadd.f32 %v373_v13, %v372_v11  ;;  %371 = vst.msk [vmem:[%s278_s29 + $0x18] sm:$0xff] %vm367_vm1, %v364_v10 }
  0xa7   : > { %v390_v18 = vsel %vm367_vm1, %v386_v14, 0.0  ;;  %v394_v26 = vsel %vm367_vm1, %v388_v19, 0.0 }
  0xa8   : > { %v391_v20 = vadd.f32 %v390_v18, %v389_v16  ;;  %v376_v21 = vadd.f32 %v375_v17, %v374_v15 }
  0xaa   : > { %v378_v24 = vadd.f32 %v377_v23, %v376_v21  ;;  %v393_v25 = vadd.f32 %v392_v22, %v391_v20 }
  0xac   : > { %v379_v27 = vrot.slane %v378_v24, 4  ;;  %v395_v28 = vadd.f32 %v394_v26, %v393_v25 }
  0xae   : > { %v380_v29 = vadd.f32 %v379_v27, %v378_v24  ;;  %v396_v30 = vrot.slane %v395_v28, 4 }
  0xb0   : > { %v381_v31 = vrot.slane %v380_v29, 2  ;;  %v397_v32 = vadd.f32 %v396_v30, %v395_v28 }
  0xb2   : > { %v382_v33 = vadd.f32 %v381_v31, %v380_v29  ;;  %v398_v34 = vrot.slane %v397_v32, 2 }
  0xb4   : > { %v383_v35 = vrot.slane %v382_v33, 1  ;;  %v399_v36 = vadd.f32 %v398_v34, %v397_v32 }
  0xb6   : > { %v384_v37 = vadd.f32 %v383_v35, %v382_v33  ;;  %v400_v38 = vrot.slane %v399_v36, 1 }
  0xb8   : > { %v401_v39 = vadd.f32 %v400_v38, %v399_v36  ;;  %402 = vst.msk [vmem:[%s286_s7] sm:$0xff] %vm367_vm1, %v384_v37 }
  0xba   : > { %403 = vst.msk [vmem:[%s293_s10] sm:$0xff] %vm367_vm1, %v401_v39 }
  0xbb PF: > { %s15_s17 = sadd.s32 1, %s685_s17   ;;  %s778_s15 = smov %s681_s16 }
  0xbc   : > { %p12_p5 = scmp.ge.s32.totalorder %s15_s17, 6   ;;  %s779_s16 = smov %s781_s18 }
  0xbe   :  { %14 = sbr.rel (!%p12_p5) target bundleno = 2 (0x2), region = 85 }

// kernel: a_call__.8
= control target key start
LH: loop header
LB: loop body
LE: loop exit
PB: predicated region body
PF: predicated region fallthrough
CT: control target
= control target key end

     0   :  { %s413_s12 = smov 0   ;;  %s415_s13 = smov 0   ;;  %s452_s0 = inlined_call_operand.vmem [shape: f32[4,32,8], index: 0, kind: input, shape index: {}]   ;;  %s453_s1 = inlined_call_operand.vmem [shape: f32[1,8], index: 1, kind: input, shape index: {}]   ;;  %s454_s2 = inlined_call_operand.vmem [shape: f32[1,8], index: 2, kind: input, shape index: {}]   ;;  %s455_s3 = inlined_call_operand.vmem [shape: bf16[4,32,8], index: 3, kind: output, shape index: {}]  }
   0x1   :  { %s417_s14 = smov 0  }
   0x2 LB: > { %s25_s15 = sadd.s32 1, %s387_s13  ;;  %p334_p0 = scmp.ge.s32.totalorder %s391_s14, 1  ;;  %s391_s14 = sphi %s417_s14, %s13_s14   ;;  %s387_s13 = sphi %s415_s13, %s457_s13   ;;  %s383_s12 = sphi %s413_s12, %s456_s12  }
   0x3   : > { %p27_p1 = scmp.ge.s32.totalorder %s25_s15, 4  ;;  %p158_p2 = scmp.lt.s32.totalorder %s391_s14, 5 }
   0x5   : > { %s459_s15 = smov (%p27_p1, %s25_s15), 0  ;;  %p159_p3 = pnand %p334_p0, %p158_p2 }
   0x6   : > { %p191_p4 = scmp.lt.s32.totalorder (!%p159_p3), %s383_s12, 3 }
   0x7   : > { %162 = sbr.rel (%p159_p3) target bundleno = 28 (0x1c), region = 32 }
   0xc   : > { %s461_s12 = smov (!%p191_p4, %s383_s12), 3  ;;  %v367_v0 = vld [vmem:[%s453_s1] ss:$0 sm:$0xff]  ;;  %vm238_vm0 = vcmask 60416  }
   0xd   : > { %s341_s18 = sshll.u32 %s461_s12, 5  ;;  %v368_v1 = vld [vmem:[%s454_s2] ss:$0 sm:$0xff]  ;;  %s342_s24 = sshll.u32 %s461_s12, 4 }
   0xe   : > { %s198_s21 = scalar_lea.vmem %s452_s0, %s341_s18  ;;  %s208_s27 = scalar_lea.vmem %s455_s3, %s342_s24 }
   0xf   : > { %v210_v2 = vld [vmem:[%s198_s21] sm:$0xff]  ;;  %v211_v3 = vld [vmem:[%s198_s21 + $0x8] sm:$0xff]  ;;  %v212_v4 = vld [vmem:[%s198_s21 + $0x10] sm:$0xff] }
  0x10   : > { %v218_v5 = vmul.f32 %v367_v0, %v210_v2  ;;  %v219_v6 = vmul.f32 %v367_v0, %v211_v3  ;;  %v220_v7 = vmul.f32 %v367_v0, %v212_v4  ;;  %v213_v8 = vld [vmem:[%s198_s21 + $0x18] sm:$0xff] }
  0x11   : > { %v221_v9 = vmul.f32 %v367_v0, %v213_v8 }
  0x12   : > { %v226_v10 = vadd.f32 %v368_v1, %v218_v5  ;;  %v227_v11 = vadd.f32 %v368_v1, %v219_v6  ;;  %v228_v12 = vadd.f32 %v368_v1, %v220_v7 }
  0x13   : > { %v229_v13 = vadd.f32 %v368_v1, %v221_v9 }
  0x14   : > { %v230_v14 = vmax.f32 %v226_v10, 0.0  ;;  %v231_v15 = vmax.f32 %v227_v11, 0.0  ;;  %v232_v16 = vmax.f32 %v228_v12, 0.0 }
  0x15   : > { %v233_v17 = vmax.f32 %v229_v13, 0.0 }
  0x16   : > { %v234_v18 = vpack.c.bf16 %v230_v14, %v230_v14  ;;  %v235_v19 = vpack.c.bf16 %v231_v15, %v231_v15  ;;  %v236_v20 = vpack.c.bf16 %v232_v16, %v232_v16 }
  0x17   : > { %v237_v21 = vpack.c.bf16 %v233_v17, %v233_v17 }
  0x18   : > { %239 = vst.msk [vmem:[%s208_s27] sm:$0xf] %vm238_vm0, %v234_v18 }
  0x19   : > { %240 = vst.msk [vmem:[%s208_s27 + $0x4] sm:$0xf] %vm238_vm0, %v235_v19 }
  0x1a   : > { %241 = vst.msk [vmem:[%s208_s27 + $0x8] sm:$0xf] %vm238_vm0, %v236_v20 }
  0x1b   : > { %242 = vst.msk [vmem:[%s208_s27 + $0xc] sm:$0xf] %vm238_vm0, %v237_v21 }
  0x1c PF: > { %s13_s14 = sadd.s32 1, %s391_s14   ;;  %s456_s12 = smov %s387_s13 }
  0x1d   : > { %p10_p5 = scmp.ge.s32.totalorder %s13_s14, 6   ;;  %s457_s13 = smov %s459_s15 }
  0x1f   :  { %12 = sbr.rel (!%p10_p5) target bundleno = 2 (0x2), region = 62 }

// kernel: a_call__.9
= control target key start
LH: loop header
LB: loop body
LE: loop exit
PB: predicated region body
PF: predicated region fallthrough
CT: control target
= control target key end

     0   :  { %s404_s9 = smov 0   ;;  %s406_s10 = smov 0   ;;  %s437_s0 = inlined_call_operand.vmem [shape: bf16[4,8,32], index: 0, kind: input, shape index: {}]   ;;  %s438_s1 = inlined_call_operand.vmem [shape: bf16[4,32,128], index: 1, kind: input, shape index: {}]   ;;  %s439_s2 = inlined_call_operand.vmem [shape: f32[4,8,128], index: 2, kind: output, shape index: {}]  }
   0x1   :  { %s408_s11 = smov 0  }
   0x2 LB: > { %s24_s12 = sadd.s32 1, %s383_s10  ;;  %p320_p0 = scmp.ge.s32.totalorder %s387_s11, 1  ;;  %s387_s11 = sphi %s408_s11, %s12_s11   ;;  %s383_s10 = sphi %s406_s10, %s441_s10   ;;  %s379_s9 = sphi %s404_s9, %s440_s9  }
   0x3   : > { %p26_p1 = scmp.ge.s32.totalorder %s24_s12, 4  ;;  %p140_p2 = scmp.lt.s32.totalorder %s387_s11, 5 }
   0x5   : > { %s443_s12 = smov (%p26_p1, %s24_s12), 0  ;;  %p141_p3 = pnand %p320_p0, %p140_p2 }
   0x6   : > { %p171_p4 = scmp.lt.s32.totalorder (!%p141_p3), %s379_s9, 3 }
   0x7   : > { %144 = sbr.rel (%p141_p3) target bundleno = 157 (0x9d), region = 28 }
   0xc   : > { %s445_s9 = smov (!%p171_p4, %s379_s9), 3  ;;  %vm208_vm0 = vcmask 261120  }
   0xd   : > { %s336_s13 = sshll.u32 %s445_s9, 4  ;;  %s321_s17 = sshll.u32 %s445_s9, 2 }
   0xe   : > { %s182_s16 = scalar_lea.vmem %s438_s1, %s336_s13  ;;  %s174_s20 = scalar_lea.vmem %s437_s0, %s321_s17 }
   0xf   : > { %v338_v0 = vld [vmem:[%s182_s16 + $0x8] sm:$0xff]  ;;  %v337_v1 = vld [vmem:[%s182_s16] sm:$0xff]  ;;  %s324_s21 = sshll.u32 %s445_s9, 3 }
  0x10   : > { %218 = vmatpush.bf16.msra.mxu0 %v338_v0  ;;  %v191_v2 = vld [vmem:[%s174_s20] sm:$0xf]  ;;  %s189_s24 = scalar_lea.vmem %s439_s2, %s324_s21 }
  0x14   : > { %219 = vmatpush.bf16.msra.mxu0 %v337_v1 }
  0x17   : > { %333 = vmatmul.msk.bf16.vlgmr.msra.gmra.mxu0 %vm208_vm0, %v191_v2 }
  0x94   : > { %v221_v3 = vpop.f32.mrf.mxu0 }
  0x95   : > { %363 = vtanh.f32 %v221_v3 }
  0x9b   : > { %v364_v4 = vpop.eup %363 }
  0x9c   : > { %226 = vst [vmem:[%s189_s24] sm:$0xff] %v364_v4  ;;  %v223_v5 = vpop.f32.mrf.mxu0 }
  0x9d PF: > { %s12_s11 = sadd.s32 1, %s387_s11   ;;  %s440_s9 = smov %s383_s10 }
  0x9e   : > { %p9_p5 = scmp.ge.s32.totalorder %s12_s11, 6   ;;  %s441_s10 = smov %s443_s12 }
  0xa0   :  { %11 = sbr.rel (!%p9_p5) target bundleno = 2 (0x2), region = 61 }

</bundles_post_ra>
